<compile_context>
chip_gen: v6e
topology: v6e:2x2x1
jax: 0.10.0
libtpu: 0.0.40
codegen_flags: <defaults>
</compile_context>

<pallas_src>
import jax
import jax.numpy as jnp
from jax.experimental import pallas as pl
from jax.experimental.pallas import tpu as pltpu

_MiB = 1024 * 1024


def _round_up(x, m):
    return ((x + m - 1) // m) * m


def _vmem_capacity_bytes():
    try:
        return int(pltpu.get_tpu_info().vmem_capacity_bytes)
    except Exception:
        return 64 * _MiB  # conservative fallback (v7x per-TC VMEM)


def adapter_kernel(x_ref, w1t_ref, w2t_ref, o_ref):
    """One (tile_n, C) slab of rows.

    x_ref:   (tile_n, C)  input rows (f32 or bf16)
    w1t_ref: (C, Hp)      first linear weight, pre-transposed (Hp = padded hidden)
    w2t_ref: (Hp, C)      second linear weight, pre-transposed
    o_ref:   (tile_n, C)  output rows (same dtype as x)
    """
    x = x_ref[...]
    # First matmul on the MXU with f32 accumulation; ReLU on the VPU (f32).
    h = jnp.dot(x, w1t_ref[...], preferred_element_type=jnp.float32)
    h = jnp.maximum(h, 0.0)
    # Second matmul: feed in the weights' dtype (bf16 when weights are bf16),
    # still accumulating in f32.
    y = jnp.dot(h.astype(w2t_ref.dtype), w2t_ref[...],
                preferred_element_type=jnp.float32)
    y = jnp.maximum(y, 0.0)
    o_ref[...] = y.astype(o_ref.dtype)


def prepare_adapter_weights(w1, w2, *, dtype=jnp.bfloat16, pad_hidden_to=128):
    """One-time (parameter-init) conversion from PyTorch (out, in) layout to the
    kernel's (in, out) layout.

    * dtype=bf16 is the recommended path (weights are tiny and resident; the
      kernel accumulates in f32, so only MXU inputs / HBM bytes shrink).
    * The hidden dim is zero-padded up to a multiple of `pad_hidden_to` lanes:
      zero columns of w1t stay zero through ReLU and zero rows of w2t add
      nothing, so the padding is numerically inert but keeps the hidden
      activation lane-dense on the 128-wide MXU.
    """
    w1t = jnp.asarray(w1).T  # (C, H)
    w2t = jnp.asarray(w2).T  # (H, C)
    H = w1t.shape[1]
    if pad_hidden_to and H % pad_hidden_to != 0:
        Hp = _round_up(H, pad_hidden_to)
        w1t = jnp.pad(w1t, ((0, 0), (0, Hp - H)))
        w2t = jnp.pad(w2t, ((0, Hp - H), (0, 0)))
    if dtype is not None:
        w1t = w1t.astype(dtype)
        w2t = w2t.astype(dtype)
    return w1t, w2t


def _choose_tile_n(N, C, Hp, x_itemsize, w_itemsize, vmem_budget_bytes, x_buffers):
    # Resident weights (single-buffered).
    weight_bytes = 2 * C * Hp * w_itemsize
    # Per-row VMEM: x_buffers input copies + double-buffered output copies
    # + f32 hidden h (tile*Hp*4) + f32 pre-cast y (tile*C*4).
    per_row = (x_buffers + 2) * C * x_itemsize + 4 * Hp + 4 * C
    avail = max(vmem_budget_bytes - weight_bytes, 8 * per_row)
    tile_vmem = max(8, (avail // per_row) // 8 * 8)

    # Target >= 8 grid steps total (>= 4 per TensorCore on v7x, >= 8 on v5e/v6e)
    # so the pipeline actually overlaps DMA with compute, but keep tiles >= 256
    # rows when N allows (per-step overhead ~0.35 us, roofline needs big tiles).
    tile_steps = _round_up(pl.cdiv(N, 8), 8)
    tile = max(256, tile_steps)
    tile = min(tile, tile_vmem, 1024)
    if tile >= N:
        return N  # single full-extent block (always a legal block shape)
    return max(tile, 8)


def adapter_forward(x, w1t, w2t, *, tile_n=None, x_buffers=2,
                    vmem_budget_bytes=None):
    """x: (..., C); w1t: (C, Hp); w2t: (Hp, C) (from prepare_adapter_weights)."""
    orig_shape = x.shape
    C = orig_shape[-1]
    Hp = w1t.shape[1]
    assert w1t.shape == (C, Hp) and w2t.shape == (Hp, C)

    x2 = x.reshape(-1, C)
    N = x2.shape[0]

    capacity = _vmem_capacity_bytes()
    if vmem_budget_bytes is None:
        # Leave ~24 MiB for Mosaic scratch / semaphores / bookkeeping.
        vmem_budget_bytes = max(capacity - 24 * _MiB, 16 * _MiB)
    vmem_budget_bytes = min(vmem_budget_bytes, capacity - 8 * _MiB)

    x_itemsize = jnp.dtype(x2.dtype).itemsize
    w_itemsize = jnp.dtype(w1t.dtype).itemsize
    if tile_n is None:
        tile_n = _choose_tile_n(N, C, Hp, x_itemsize, w_itemsize,
                                vmem_budget_bytes, x_buffers)

    # No host-side padding: Pallas masks writes of the ragged last block and the
    # out-of-bounds input rows are don't-care (each output row depends only on
    # its own input row).
    grid = (pl.cdiv(N, tile_n),)

    # vmem limit derived from the actual footprint + headroom, capped below the
    # physical per-TC capacity (never ask for all of it).
    footprint = (2 * C * Hp * w_itemsize
                 + (x_buffers + 2) * tile_n * C * x_itemsize
                 + tile_n * Hp * 4 + tile_n * C * 4)
    vmem_limit = min(capacity - 8 * _MiB, footprint + 16 * _MiB)
    vmem_limit = int(max(vmem_limit, 32 * _MiB))

    out = pl.pallas_call(
        adapter_kernel,
        out_shape=jax.ShapeDtypeStruct((N, C), x2.dtype),
        grid_spec=pltpu.PrefetchScalarGridSpec(
            num_scalar_prefetch=0,
            grid=grid,
            in_specs=[
                pl.BlockSpec((tile_n, C), lambda i: (i, 0),
                             pipeline_mode=pl.Buffered(x_buffers)),
                # Constant index_map -> weights stay resident; single-buffer them
                # so the saved VMEM goes to larger row tiles instead.
                pl.BlockSpec((C, Hp), lambda i: (0, 0),
                             pipeline_mode=pl.Buffered(1)),
                pl.BlockSpec((Hp, C), lambda i: (0, 0),
                             pipeline_mode=pl.Buffered(1)),
            ],
            out_specs=pl.BlockSpec((tile_n, C), lambda i: (i, 0)),
        ),
        compiler_params=pltpu.CompilerParams(
            dimension_semantics=("parallel",),
            vmem_limit_bytes=vmem_limit,
        ),
    )(x2, w1t, w2t)

    return out.reshape(orig_shape)


if __name__ == "__main__":
    key = jax.random.PRNGKey(0)
    k_x, k_w1, k_w2 = jax.random.split(key, 3)

    # Small but lane-friendly shapes: C multiple of 128 keeps output stores dense.
    c_in = 256
    reduction = 4
    hidden = c_in // reduction        # 64 (zero-padded to 128 at weight prep)
    batch, seq = 3, 200               # N = 600 rows -> exercises the ragged last tile

    x = jax.random.normal(k_x, (batch, seq, c_in), dtype=jnp.float32)
    # PyTorch nn.Linear weight layout: (out_features, in_features)
    w1 = jax.random.normal(k_w1, (hidden, c_in), dtype=jnp.float32) * 0.05
    w2 = jax.random.normal(k_w2, (c_in, hidden), dtype=jnp.float32) * 0.05

    ref = jnp.maximum(jnp.maximum(x @ w1.T, 0.0) @ w2.T, 0.0)

    # f32 path — exact check (hidden-dim zero padding is numerically inert).
    w1t32, w2t32 = prepare_adapter_weights(w1, w2, dtype=jnp.float32)
    out = jax.block_until_ready(adapter_forward(x, w1t32, w2t32))
    assert out.shape == ref.shape
    assert jnp.allclose(out, ref, atol=1e-4, rtol=1e-4), "f32 mismatch vs reference"

    # Small-batch path (single full-extent block).
    x_small = x[0, :8]                              # (8, 256)
    out_small = jax.block_until_ready(adapter_forward(x_small, w1t32, w2t32))
    assert jnp.allclose(out_small, ref[0, :8], atol=1e-4, rtol=1e-4), \
        "small-batch mismatch vs reference"

    # bf16 default path (halves HBM traffic; kernel still accumulates in f32).
    w1tb, w2tb = prepare_adapter_weights(w1, w2)     # bf16 by default
    xb = x.astype(jnp.bfloat16)
    out_b = jax.block_until_ready(adapter_forward(xb, w1tb, w2tb))
    assert jnp.allclose(out_b.astype(jnp.float32), ref, atol=0.1, rtol=0.1), \
        "bf16 mismatch vs reference"

    print("KERNEL_OK")
</pallas_src>

<mosaic_0001>
module attributes {stable_mosaic.version = 11 : i64} {
  func.func @adapter_kernel(%arg0: i32, %arg1: memref<256x256xf32, #tpu.memory_space<vmem>>, %arg2: memref<256x128xf32, #tpu.memory_space<vmem>>, %arg3: memref<128x256xf32, #tpu.memory_space<vmem>>, %arg4: memref<256x256xf32, #tpu.memory_space<vmem>>) attributes {dimension_semantics = [#tpu.dimension_semantics<parallel>], iteration_bounds = array<i64: 3>, scalar_prefetch = 0 : i64, scratch_operands = 0 : i64, tpu.core_type = #tpu.core_type<tc>, window_params = [{pipeline_mode = #tpu.pipeline_mode<double_buffered>, transform_indices = @transform_0, window_bounds = array<i64: 256, 256>}, {pipeline_mode = #tpu.pipeline_mode<synchronous>, transform_indices = @transform_1, window_bounds = array<i64: 256, 128>}, {pipeline_mode = #tpu.pipeline_mode<synchronous>, transform_indices = @transform_2, window_bounds = array<i64: 128, 256>}, {transform_indices = @transform_3, window_bounds = array<i64: 256, 256>}]} {
    %c0 = arith.constant 0 : index
    %c0_0 = arith.constant 0 : index
    %0 = vector.load %arg1[%c0, %c0_0] : memref<256x256xf32, #tpu.memory_space<vmem>>, vector<256x256xf32>
    %c0_1 = arith.constant 0 : index
    %c0_2 = arith.constant 0 : index
    %1 = vector.load %arg2[%c0_1, %c0_2] : memref<256x128xf32, #tpu.memory_space<vmem>>, vector<256x128xf32>
    %cst = arith.constant dense<0.000000e+00> : vector<256x128xf32>
    %2 = tpu.matmul %0, %1, %cst {dimension_numbers = #tpu.dot_dimension_numbers<[1], [0], [0], [1], [0, 0, 1, 1], [], []>} : vector<256x256xf32>, vector<256x128xf32>, vector<256x128xf32> -> vector<256x128xf32>
    %cst_3 = arith.constant 0.000000e+00 : f32
    %3 = vector.broadcast %cst_3 : f32 to vector<256x128xf32>
    %4 = arith.maximumf %2, %3 : vector<256x128xf32>
    %c0_4 = arith.constant 0 : index
    %c0_5 = arith.constant 0 : index
    %5 = vector.load %arg3[%c0_4, %c0_5] : memref<128x256xf32, #tpu.memory_space<vmem>>, vector<128x256xf32>
    %cst_6 = arith.constant dense<0.000000e+00> : vector<256x256xf32>
    %6 = tpu.matmul %4, %5, %cst_6 {dimension_numbers = #tpu.dot_dimension_numbers<[1], [0], [0], [1], [0, 0, 1, 1], [], []>} : vector<256x128xf32>, vector<128x256xf32>, vector<256x256xf32> -> vector<256x256xf32>
    %cst_7 = arith.constant 0.000000e+00 : f32
    %7 = vector.broadcast %cst_7 : f32 to vector<256x256xf32>
    %8 = arith.maximumf %6, %7 : vector<256x256xf32>
    %c0_8 = arith.constant 0 : index
    %c0_9 = arith.constant 0 : index
    %9 = vector.load %arg4[%c0_8, %c0_9] : memref<256x256xf32, #tpu.memory_space<vmem>>, vector<256x256xf32>
    tpu.vector_store %arg4[%c0_8, %c0_9], %8 {strides = array<i32>} : memref<256x256xf32, #tpu.memory_space<vmem>>, vector<256x256xf32>,
    return
  }
  func.func @transform_0(%arg0: i32) -> (i32, i32) {
    %c0_i32 = arith.constant 0 : i32
    %c0_i32_0 = arith.constant 0 : i32
    return %arg0, %c0_i32 : i32, i32
  }
  func.func @transform_1(%arg0: i32) -> (i32, i32) {
    %c0_i32 = arith.constant 0 : i32
    %c0_i32_0 = arith.constant 0 : i32
    %c0_i32_1 = arith.constant 0 : i32
    return %c0_i32, %c0_i32_0 : i32, i32
  }
  func.func @transform_2(%arg0: i32) -> (i32, i32) {
    %c0_i32 = arith.constant 0 : i32
    %c0_i32_0 = arith.constant 0 : i32
    %c0_i32_1 = arith.constant 0 : i32
    return %c0_i32, %c0_i32_0 : i32, i32
  }
  func.func @transform_3(%arg0: i32) -> (i32, i32) {
    %c0_i32 = arith.constant 0 : i32
    %c0_i32_0 = arith.constant 0 : i32
    return %arg0, %c0_i32 : i32, i32
  }
}

</mosaic_0001>

<bundles_post_ra>
// kernel: tpu_custom_call.1
= control target key start
LH: loop header
LB: loop body
LE: loop exit
PB: predicated region body
PF: predicated region fallthrough
CT: control target
= control target key end

     0   :  { %8 = vsyncpa [#allocation3], 0  ;;  %s1818_s0 = inlined_call_operand.hbm [shape: f32[600,256], index: 0, kind: input, shape index: {}]   ;;  %s1819_s1 = inlined_call_operand.hbm [shape: f32[256,128], index: 1, kind: input, shape index: {}]   ;;  %s1820_s2 = inlined_call_operand.hbm [shape: f32[128,256], index: 2, kind: input, shape index: {}]   ;;  %s1821_s3 = inlined_call_operand.hbm [shape: f32[600,256], index: 3, kind: output, shape index: {}]  }
   0x1   :  { %10 = vsyncpa [#allocation3 + $0x1], 0 }
   0x2   :  { %11 = vsyncpa [#allocation6], 0 }
   0x3   :  { %12 = vsyncpa [#allocation4], 0 }
   0x4   :  { %14 = vsyncpa [#allocation4 + $0x1], 0  ;;  %s1408_s12 = smov 0   ;;  %s1410_s13 = smov 0  }
   0x5   :  { %s1412_s14 = smov 0   ;;  %s1414_s15 = smov 0  }
   0x6 LB: > { %s1429_s16 = sadd.s32 4294967295, %s1373_s15   ;;  %s1122_s17 = sadd.s32 4294967294, %s1373_s15   ;;  %s1373_s15 = sphi %s1414_s15, %s1838_s15   ;;  %s1369_s14 = sphi %s1412_s14, %s1837_s14   ;;  %s1365_s13 = sphi %s1410_s13, %s1836_s13   ;;  %s1361_s12 = sphi %s1408_s12, %s1835_s12  }
   0x7   : > { %s1433_s18 = sadd.s32 1, %s1373_s15   ;;  %s27_s19 = sadd.s32 1, %s1369_s14 }
   0x8   : > { %s24_s20 = ssub.s32 %s1373_s15, %s1433_s18  ;;  %p34_p0 = scmp.ne.s32.totalorder %s1369_s14, %s1365_s13 }
   0x9   : > { %p25_p1 = scmp.eq.s32.totalorder %s24_s20, 0  ;;  %p35_p2 = scmp.eq.s32.totalorder %s1373_s15, 0 }
   0xa   : > { %p40_p3 = scmp.ne.s32.totalorder %s1365_s13, %s1361_s12  ;;  %p1822_p4 = scmp.eq.s32.totalorder %s1429_s16, 0 }
   0xb   : > { %s1445_s21 = scalar_select %p25_p1, %s1369_s14, %s27_s19  }
   0xc   : > { %p1447_p5 = por %p35_p2, %p34_p0  ;;  %p1453_p6 = por %p1822_p4, %p40_p3 }
   0xd   : > { %p106_p7 = scmp.eq.s32.totalorder %s1429_s16, 2  ;;  %p112_p8 = scmp.eq.s32.totalorder %s1122_s17, 2 }
   0xe   : > { %s1825_s23 = scalar_select %p1453_p6, 1, 0 }
   0xf   : > { %p1123_p9 = scmp.ge.s32.totalorder %s1373_s15, 1  ;;  %p119_p10 = scmp.lt.s32.totalorder %s1373_s15, 4 }
  0x10   : > { %p1460_p11 = por %p106_p7, %p34_p0  ;;  %p1464_p12 = por %p112_p8, %p40_p3 }
  0x11   : > { %p1468_p13 = pnand %p1123_p9, %p119_p10  ;;  %s1375_s27 = smov [#allocation5]  }
  0x12   : > { %s1826_s24 = scalar_select %p1460_p11, 1, 0 }
  0x13   : > { %s1827_s25 = scalar_select %p1464_p12, 1, 0 }
  0x14   : > { %p1168_p1 = pneg %p1468_p13  ;;  %s131_s28 = sshll.u32 %s1375_s27, 4  ;;  %s132_s28 = int_to_ptr.vmem [resolvable:$true] %s131_s28 }
  0x15   : > { %s1376_s30 = smov [#allocation7]   ;;  %s1238_s5 = scalar_lea.vmem %s132_s28, 4096 }
  0x16   : > { %p1476_p2 = pnand %p1168_p1, %p1822_p4  ;;  %s144_s4 = sshll.u32 %s1376_s30, 4  ;;  %s145_s4 = int_to_ptr.vmem [resolvable:$true] %s144_s4 }
  0x17   : > { %p1239_p3 = scmp.ne.s32.totalorder %s132_s28, %s1238_s5  ;;  %p1246_p9 = scmp.lt.s32.totalorder %s132_s28, %s132_s28 }
  0x18   : > { %p1229_p0 = pneg %p1476_p2  ;;  %p1247_p10 = scmp.lt.s32.totalorder %s1238_s5, %s1238_s5 }
  0x1a   : > { %p1241_p7 = pnand %p1239_p3, %p1229_p0  ;;  %p1248_p12 = por %p1247_p10, %p1246_p9 }
  0x1c   : > { %p1242_p8 = pneg %p1241_p7 }
  0x1e   : > { %p1249_p1 = pnand %p1248_p12, %p1242_p8 }
  0x20   : > { %1252 = shalt.err (!%p1249_p1)
}
  0x21   : > { %s1377_s6 = smov 128   ;;  %s1378_s7 = smov 8  }
  0x22   : > { %1171 = dma.hbm_to_vmem [thread:$0]  (!%p1476_p2), %s1819_s1, 4096, %s132_s28, [#allocation6], %s1377_s6, %s1377_s6, %s1378_s7  }
  0x23   : > { %s1264_s10 = scalar_lea.vmem %s145_s4, 4096  ;;  %p1272_p11 = scmp.lt.s32.totalorder %s145_s4, %s145_s4 }
  0x24   : > { %p1265_p4 = scmp.ne.s32.totalorder %s145_s4, %s1264_s10  ;;  %p1273_p6 = scmp.lt.s32.totalorder %s1264_s10, %s1264_s10 }
  0x26   : > { %p1267_p3 = pnand %p1265_p4, %p1229_p0  ;;  %p1274_p9 = por %p1273_p6, %p1272_p11 }
  0x28   : > { %p1268_p7 = pneg %p1267_p3 }
  0x2a   : > { %p1275_p12 = pnand %p1274_p9, %p1268_p7 }
  0x2c   : > { %1278 = shalt.err (!%p1275_p12)
}
  0x2d   : > { %s1379_s11 = smov 256   ;;  %s1380_s17 = smov 16  }
  0x2e   : > { %1174 = dma.hbm_to_vmem [thread:$0]  (!%p1476_p2), %s1820_s2, 4096, %s145_s4, [#allocation6], %s1379_s11, %s1379_s11, %s1380_s17  }
  0x2f   : > { %p1126_p8 = scmp.ge.s32.totalorder %s1373_s15, 3 }
  0x31   : > { %154 = sbr.rel (%p1126_p8) target bundleno = 86 (0x56), region = 24 }
  0x36   : > { %157 = sbr.rel (!%p1447_p5) target bundleno = 86 (0x56), region = 28  ;;  %s158_s27 = sand.u32 (%p1447_p5), 1, %s1369_s14  }
  0x37   : > { %s1128_s28 = sshll.u32 (%p1447_p5), %s1373_s15, 5  ;;  %s1127_s30 = sshll.u32 (%p1447_p5), %s158_s27, 9 }
  0x38   : > { %s164_s5 = ssub.s32 (%p1447_p5), 75, %s1128_s28  ;;  %s1506_s7 = scalar_lea.sflag (%p1447_p5), [#allocation3], %s158_s27 }
  0x39   : > { %p165_p4 = scmp.lt.s32.totalorder (%p1447_p5), %s164_s5, 32  ;;  %s162_s4 = scalar_lea.vmem (%p1447_p5), [#allocation2], %s1127_s30 }
  0x3b   : > { %s1840_s5 = smov (!%p165_p4, %s164_s5), 32 }
  0x3c   : > { %s1503_s6 = sshll.u32 %s1840_s5, 8 }
  0x3d   : > { %s170_s29 = ssub.s32 8192, %s1503_s6 }
  0x3e   : > { %171 = vsyncadd %s1506_s7, %s170_s29  ;;  %p1131_p5 = scmp.ne.s32.totalorder %s1503_s6, 0  ;;  %s1154_s22 = sshll.u32 %s1373_s15, 13 }
  0x3f   : > { %s1514_s10 = scalar_lea.hbm %s1818_s0, %s1154_s22  ;;  %s177_s11 = sshll.u32 %s162_s4, 4  ;;  %s1516_s11 = int_to_ptr.vmem [resolvable:$true] %s177_s11 }
  0x40   : > { %s1279_s17 = scalar_lea.hbm %s1514_s10, %s1503_s6  ;;  %s1283_s27 = scalar_lea.hbm %s1818_s0, 19200 }
  0x41   : > { %p1280_p6 = scmp.ne.s32.totalorder %s1514_s10, %s1279_s17  ;;  %p1284_p0 = scmp.lt.s32.totalorder %s1514_s10, %s1818_s0 }
  0x42   : > { %p1285_p10 = scmp.lt.s32.totalorder %s1283_s27, %s1279_s17 }
  0x43   : > { %p1281_p11 = pnand %p1280_p6, %p1131_p5 }
  0x44   : > { %p1286_p1 = por %p1285_p10, %p1284_p0 }
  0x45   : > { %p1282_p2 = pneg %p1281_p11 }
  0x47   : > { %p1287_p3 = pnand %p1286_p1, %p1282_p2 }
  0x49   : > { %1290 = shalt.err (!%p1287_p3)
}
  0x4a   : > { %s1291_s5 = scalar_lea.vmem %s1516_s11, %s1503_s6  ;;  %s1381_s29 = smov [#allocation2]  }
  0x4b   : > { %p1292_p7 = scmp.ne.s32.totalorder %s1516_s11, %s1291_s5  ;;  %s1295_s4 = sshll.u32 %s1381_s29, 4  ;;  %s1296_s4 = int_to_ptr.vmem [resolvable:$false] %s1295_s4 }
  0x4c   : > { %s1297_s22 = scalar_lea.vmem %s1296_s4, 16384  ;;  %p1298_p8 = scmp.lt.s32.totalorder %s1516_s11, %s1296_s4 }
  0x4d   : > { %p1293_p9 = pnand %p1292_p7, %p1131_p5  ;;  %p1299_p4 = scmp.lt.s32.totalorder %s1297_s22, %s1291_s5 }
  0x4f   : > { %p1294_p12 = pneg %p1293_p9  ;;  %p1300_p6 = por %p1299_p4, %p1298_p8 }
  0x51   : > { %p1301_p11 = pnand %p1300_p6, %p1294_p12 }
  0x53   : > { %1304 = shalt.err (!%p1301_p11)
}
  0x54   : > { %s1382_s8 = smov 256   ;;  %s1383_s9 = smov 16  }
  0x55   : > { %183 = dma.hbm_to_vmem [thread:$0]  (%p1131_p5), %s1514_s10, %s1503_s6, %s1516_s11, %s1506_s7, %s1382_s8, %s1382_s8, %s1383_s9  }
  0x56 PF: > { %189 = sbr.rel (%p1468_p13) target bundleno = 704 (0x2c0), region = 32  ;;  %s1545_s17 = sand.u32 (!%p1468_p13), 1, %s1365_s13  }
  0x57   : > { %s1137_s19 = sshll.u32 (!%p1468_p13), %s1545_s17, 9  ;;  %s192_s20 = scalar_lea.sflag (!%p1468_p13), [#allocation3], %s1545_s17 }
  0x58   : > { %s1551_s27 = scalar_lea.vmem (!%p1468_p13), [#allocation2], %s1137_s19  ;;  %p1830_p2 = scmp.ne.s32.totalorder (!%p1468_p13), %s1825_s23, 0 }
  0x5b   : > { %1348 = dma.done.wait (%p1830_p2), %s192_s20, 8192  }
  0x5c   : > { %1350 = vsyncadd (%p1830_p2), %s192_s20, 4294959104  ;;  %p1831_p5 = scmp.eq.s32.totalorder %s1429_s16, 0 }
  0x5e   : > { %1352 = dma.done.wait (%p1831_p5), [#allocation6], 8192   ;;  %p1832_p13 = pmov %p1831_p5 }
  0x5f   : > { %v1384_v0 = vmov 0.0   ;;  %v317_v1 = vld [vmem:[#allocation5 + $0x78] sm:$0xff]  ;;  %v316_v2 = vld [vmem:[#allocation5 + $0x70] sm:$0xff]  ;;  %v315_v3 = vld [vmem:[#allocation5 + $0x68] sm:$0xff]  ;;  %s1691_s23 = scalar_lea.vmem [#allocation8], %s1137_s19  ;;  %s1009_s26 = scalar_lea.sflag [#allocation4], %s1545_s17 }
  0x60   : > { %1354 = vsyncadd (%p1832_p13), [#allocation6], 4294959104  ;;  %334 = vmatprep.subr.mxu0 %v1384_v0  ;;  %687 = vmatprep.mubr.f32.mxu1 %v1384_v0  ;;  %v314_v4 = vld [vmem:[#allocation5 + $0x60] sm:$0xff]  ;;  %v313_v5 = vld [vmem:[#allocation5 + $0x58] sm:$0xff]  ;;  %p1833_p0 = scmp.ne.s32.totalorder %s1826_s24, 0 }
  0x61   : > { %335 = vmatpush1.msra.mxu0 %v317_v1  ;;  %v312_v6 = vld [vmem:[#allocation5 + $0x50] sm:$0xff]  ;;  %v311_v7 = vld [vmem:[#allocation5 + $0x48] sm:$0xff]  ;;  %v310_v9 = vld [vmem:[#allocation5 + $0x40] sm:$0xff]  ;;  %s1142_s6 = sshll.u32 (%p1833_p0), %s1429_s16, 5 }
  0x62   : > { %336 = vmatprep.subr.mxu0 %v1384_v0  ;;  %v239_v8 = vld [vmem:[%s1551_s27 + $0x8] sm:$0xff]  ;;  %v309_v10 = vld [vmem:[#allocation5 + $0x38] sm:$0xff]  ;;  %v308_v11 = vld [vmem:[#allocation5 + $0x30] sm:$0xff]  ;;  %s1017_s7 = ssub.s32 (%p1833_p0), 75, %s1142_s6 }
  0x63   : > { %337 = vmatpush1.msra.mxu0 %v316_v2  ;;  %398 = vmatprep.mubr.f32.mxu0 %v239_v8  ;;  %v307_v12 = vld [vmem:[#allocation5 + $0x28] sm:$0xff]  ;;  %v306_v13 = vld [vmem:[#allocation5 + $0x20] sm:$0xff]  ;;  %v305_v14 = vld [vmem:[#allocation5 + $0x18] sm:$0xff]  ;;  %p1018_p10 = scmp.lt.s32.totalorder (%p1833_p0), %s1017_s7, 32 }
  0x64   : > { %338 = vmatprep.subr.mxu0 %v1384_v0  ;;  %v304_v15 = vld [vmem:[#allocation5 + $0x10] sm:$0xff]  ;;  %v303_v16 = vld [vmem:[#allocation5 + $0x8] sm:$0xff]  ;;  %v302_v17 = vld [vmem:[#allocation5] sm:$0xff] }
  0x65   : > { %339 = vmatpush1.msra.mxu0 %v315_v3  ;;  %v333_v18 = vld [vmem:[#allocation5 + $0xf8] sm:$0xff]  ;;  %v332_v19 = vld [vmem:[#allocation5 + $0xf0] sm:$0xff]  ;;  %v331_v20 = vld [vmem:[#allocation5 + $0xe8] sm:$0xff] }
  0x66   : > { %340 = vmatprep.subr.mxu0 %v1384_v0  ;;  %v330_v21 = vld [vmem:[#allocation5 + $0xe0] sm:$0xff]  ;;  %v329_v22 = vld [vmem:[#allocation5 + $0xd8] sm:$0xff]  ;;  %v328_v23 = vld [vmem:[#allocation5 + $0xd0] sm:$0xff] }
  0x67   : > { %341 = vmatpush1.msra.mxu0 %v314_v4  ;;  %v327_v24 = vld [vmem:[#allocation5 + $0xc8] sm:$0xff]  ;;  %v326_v25 = vld [vmem:[#allocation5 + $0xc0] sm:$0xff]  ;;  %v325_v26 = vld [vmem:[#allocation5 + $0xb8] sm:$0xff] }
  0x68   : > { %342 = vmatprep.subr.mxu0 %v1384_v0  ;;  %v324_v27 = vld [vmem:[#allocation5 + $0xb0] sm:$0xff]  ;;  %v323_v28 = vld [vmem:[#allocation5 + $0xa8] sm:$0xff]  ;;  %v322_v29 = vld [vmem:[#allocation5 + $0xa0] sm:$0xff] }
  0x69   : > { %343 = vmatpush1.msra.mxu0 %v313_v5  ;;  %v321_v30 = vld [vmem:[#allocation5 + $0x98] sm:$0xff]  ;;  %v320_v31 = vld [vmem:[#allocation5 + $0x90] sm:$0xff]  ;;  %v319_v32 = vld [vmem:[#allocation5 + $0x88] sm:$0xff] }
  0x6a   : > { %344 = vmatprep.subr.mxu0 %v1384_v0  ;;  %v318_v33 = vld [vmem:[#allocation5 + $0x80] sm:$0xff]  ;;  %v622_v34 = vld [vmem:[#allocation7 + $0xf8] sm:$0xff]  ;;  %v621_v35 = vld [vmem:[#allocation7 + $0xf0] sm:$0xff] }
  0x6b   : > { %345 = vmatpush1.msra.mxu0 %v312_v6  ;;  %v620_v36 = vld [vmem:[#allocation7 + $0xe8] sm:$0xff]  ;;  %v238_v37 = vld [vmem:[%s1551_s27] sm:$0xff]  ;;  %623 = vmatprep.subr.mxu1 %v622_v34  ;;  %v241_v39 = vld [vmem:[%s1551_s27 + $0x18] sm:$0xff] }
  0x6c   : > { %346 = vmatprep.subr.mxu0 %v1384_v0  ;;  %v619_v38 = vld [vmem:[#allocation7 + $0xe0] sm:$0xff]  ;;  %624 = vmatpush1.msra.mxu1 %v621_v35  ;;  %v618_v40 = vld [vmem:[#allocation7 + $0xd8] sm:$0xff]  ;;  %v617_v41 = vld [vmem:[#allocation7 + $0xd0] sm:$0xff] }
  0x6d   : > { %347 = vmatpush1.msra.mxu0 %v311_v7  ;;  %625 = vmatprep.subr.mxu1 %v620_v36  ;;  %v616_v42 = vld [vmem:[#allocation7 + $0xc8] sm:$0xff]  ;;  %v240_v43 = vld [vmem:[%s1551_s27 + $0x10] sm:$0xff]  ;;  %v615_v44 = vld [vmem:[#allocation7 + $0xc0] sm:$0xff] }
  0x6e   : > { %348 = vmatprep.subr.mxu0 %v1384_v0  ;;  %626 = vmatpush1.msra.mxu1 %v619_v38  ;;  %v243_v45 = vld [vmem:[%s1551_s27 + $0x28] sm:$0xff]  ;;  %v614_v46 = vld [vmem:[#allocation7 + $0xb8] sm:$0xff]  ;;  %v613_v47 = vld [vmem:[#allocation7 + $0xb0] sm:$0xff] }
  0x6f   : > { %349 = vmatpush1.msra.mxu0 %v310_v9  ;;  %627 = vmatprep.subr.mxu1 %v618_v40  ;;  %v612_v48 = vld [vmem:[#allocation7 + $0xa8] sm:$0xff]  ;;  %v242_v49 = vld [vmem:[%s1551_s27 + $0x20] sm:$0xff]  ;;  %v245_v51 = vld [vmem:[%s1551_s27 + $0x38] sm:$0xff] }
  0x70   : > { %350 = vmatprep.subr.mxu0 %v1384_v0  ;;  %628 = vmatpush1.msra.mxu1 %v617_v41  ;;  %v611_v50 = vld [vmem:[#allocation7 + $0xa0] sm:$0xff]  ;;  %v610_v52 = vld [vmem:[#allocation7 + $0x98] sm:$0xff]  ;;  %v609_v53 = vld [vmem:[#allocation7 + $0x90] sm:$0xff] }
  0x71   : > { %351 = vmatpush1.msra.mxu0 %v309_v10  ;;  %629 = vmatprep.subr.mxu1 %v616_v42  ;;  %v608_v54 = vld [vmem:[#allocation7 + $0x88] sm:$0xff]  ;;  %v244_v55 = vld [vmem:[%s1551_s27 + $0x30] sm:$0xff]  ;;  %v607_v56 = vld [vmem:[#allocation7 + $0x80] sm:$0xff] }
  0x72   : > { %352 = vmatprep.subr.mxu0 %v1384_v0  ;;  %630 = vmatpush1.msra.mxu1 %v615_v44  ;;  %v247_v57 = vld [vmem:[%s1551_s27 + $0x48] sm:$0xff]  ;;  %v606_v58 = vld [vmem:[#allocation7 + $0x78] sm:$0xff]  ;;  %v605_v59 = vld [vmem:[#allocation7 + $0x70] sm:$0xff] }
  0x73   : > { %353 = vmatpush1.msra.mxu0 %v308_v11  ;;  %631 = vmatprep.subr.mxu1 %v614_v46  ;;  %v604_v60 = vld [vmem:[#allocation7 + $0x68] sm:$0xff]  ;;  %v246_v61 = vld [vmem:[%s1551_s27 + $0x40] sm:$0xff]  ;;  %v249_v63 = vld [vmem:[%s1551_s27 + $0x58] sm:$0xff] }
  0x74   : > { %354 = vmatprep.subr.mxu0 %v1384_v0  ;;  %632 = vmatpush1.msra.mxu1 %v613_v47  ;;  %v603_v62 = vld [vmem:[#allocation7 + $0x60] sm:$0xff]  ;;  %v602_v1 = vld [vmem:[#allocation7 + $0x58] sm:$0xff]  ;;  %v601_v2 = vld [vmem:[#allocation7 + $0x50] sm:$0xff] }
  0x75   : > { %355 = vmatpush1.msra.mxu0 %v307_v12  ;;  %633 = vmatprep.subr.mxu1 %v612_v48  ;;  %v600_v3 = vld [vmem:[#allocation7 + $0x48] sm:$0xff]  ;;  %v248_v4 = vld [vmem:[%s1551_s27 + $0x50] sm:$0xff]  ;;  %v599_v5 = vld [vmem:[#allocation7 + $0x40] sm:$0xff] }
  0x76   : > { %356 = vmatprep.subr.mxu0 %v1384_v0  ;;  %634 = vmatpush1.msra.mxu1 %v611_v50  ;;  %v251_v6 = vld [vmem:[%s1551_s27 + $0x68] sm:$0xff]  ;;  %v598_v7 = vld [vmem:[#allocation7 + $0x38] sm:$0xff]  ;;  %v597_v8 = vld [vmem:[#allocation7 + $0x30] sm:$0xff] }
  0x77   : > { %357 = vmatpush1.msra.mxu0 %v306_v13  ;;  %635 = vmatprep.subr.mxu1 %v610_v52  ;;  %v596_v9 = vld [vmem:[#allocation7 + $0x28] sm:$0xff]  ;;  %v250_v10 = vld [vmem:[%s1551_s27 + $0x60] sm:$0xff]  ;;  %v253_v12 = vld [vmem:[%s1551_s27 + $0x78] sm:$0xff] }
  0x78   : > { %358 = vmatprep.subr.mxu0 %v1384_v0  ;;  %636 = vmatpush1.msra.mxu1 %v609_v53  ;;  %v595_v11 = vld [vmem:[#allocation7 + $0x20] sm:$0xff]  ;;  %v594_v13 = vld [vmem:[#allocation7 + $0x18] sm:$0xff]  ;;  %v593_v34 = vld [vmem:[#allocation7 + $0x10] sm:$0xff] }
  0x79   : > { %359 = vmatpush1.msra.mxu0 %v305_v14  ;;  %637 = vmatprep.subr.mxu1 %v608_v54  ;;  %v252_v14 = vld [vmem:[%s1551_s27 + $0x70] sm:$0xff]  ;;  %v592_v35 = vld [vmem:[#allocation7 + $0x8] sm:$0xff]  ;;  %v277_v40 = vld [vmem:[%s1551_s27 + $0x138] sm:$0xff] }
  0x7a   : > { %360 = vmatprep.subr.mxu0 %v1384_v0  ;;  %638 = vmatpush1.msra.mxu1 %v607_v56  ;;  %v272_v36 = vld [vmem:[%s1551_s27 + $0x110] sm:$0xff]  ;;  %v275_v38 = vld [vmem:[%s1551_s27 + $0x128] sm:$0xff]  ;;  %v281_v44 = vld [vmem:[%s1551_s27 + $0x158] sm:$0xff] }
  0x7b   : > { %361 = vmatpush1.msra.mxu0 %v304_v15  ;;  %639 = vmatprep.subr.mxu1 %v606_v58  ;;  %v255_v15 = vld [vmem:[%s1551_s27 + $0x88] sm:$0xff]  ;;  %v276_v41 = vld [vmem:[%s1551_s27 + $0x130] sm:$0xff]  ;;  %v282_v47 = vld [vmem:[%s1551_s27 + $0x160] sm:$0xff] }
  0x7c   : > { %362 = vmatprep.subr.mxu0 %v1384_v0  ;;  %640 = vmatpush1.msra.mxu1 %v605_v59  ;;  %v279_v42 = vld [vmem:[%s1551_s27 + $0x148] sm:$0xff]  ;;  %v285_v48 = vld [vmem:[%s1551_s27 + $0x178] sm:$0xff]  ;;  %v288_v53 = vld [vmem:[%s1551_s27 + $0x190] sm:$0xff] }
  0x7d   : > { %363 = vmatpush1.msra.mxu0 %v303_v16  ;;  %641 = vmatprep.subr.mxu1 %v604_v60  ;;  %v254_v16 = vld [vmem:[%s1551_s27 + $0x80] sm:$0xff]  ;;  %v283_v46 = vld [vmem:[%s1551_s27 + $0x168] sm:$0xff]  ;;  %v289_v52 = vld [vmem:[%s1551_s27 + $0x198] sm:$0xff] }
  0x7e   : > { %364 = vmatprep.subr.mxu0 %v1384_v0  ;;  %642 = vmatpush1.msra.mxu1 %v603_v62  ;;  %v287_v50 = vld [vmem:[%s1551_s27 + $0x188] sm:$0xff]  ;;  %v293_v56 = vld [vmem:[%s1551_s27 + $0x1b8] sm:$0xff]  ;;  %v294_v59 = vld [vmem:[%s1551_s27 + $0x1c0] sm:$0xff] }
  0x7f   : > { %365 = vmatpush1.msra.mxu0 %v302_v17  ;;  %643 = vmatprep.subr.mxu1 %v602_v1  ;;  %v257_v17 = vld [vmem:[%s1551_s27 + $0x98] sm:$0xff]  ;;  %v291_v54 = vld [vmem:[%s1551_s27 + $0x1a8] sm:$0xff] }
  0x80   : > { %366 = vmatprep.subr.mxu0 %v1384_v0  ;;  %644 = vmatpush1.msra.mxu1 %v601_v2  ;;  %v295_v58 = vld [vmem:[%s1551_s27 + $0x1c8] sm:$0xff]  ;;  %v297_v60 = vld [vmem:[%s1551_s27 + $0x1d8] sm:$0xff]  ;;  %v300_v2 = vld [vmem:[%s1551_s27 + $0x1f0] sm:$0xff] }
  0x81   : > { %367 = vmatpush2.msra.mxu0 %v333_v18  ;;  %645 = vmatprep.subr.mxu1 %v600_v3  ;;  %v256_v18 = vld [vmem:[%s1551_s27 + $0x90] sm:$0xff]  ;;  %v299_v62 = vld [vmem:[%s1551_s27 + $0x1e8] sm:$0xff]  ;;  %v301_v1 = vld [vmem:[%s1551_s27 + $0x1f8] sm:$0xff] }
  0x82   : > { %368 = vmatprep.subr.mxu0 %v1384_v0  ;;  %646 = vmatpush1.msra.mxu1 %v599_v5 }
  0x83   : > { %369 = vmatpush2.msra.mxu0 %v332_v19  ;;  %647 = vmatprep.subr.mxu1 %v598_v7  ;;  %v259_v19 = vld [vmem:[%s1551_s27 + $0xa8] sm:$0xff] }
  0x84   : > { %370 = vmatprep.subr.mxu0 %v1384_v0  ;;  %648 = vmatpush1.msra.mxu1 %v597_v8 }
  0x85   : > { %371 = vmatpush2.msra.mxu0 %v331_v20  ;;  %649 = vmatprep.subr.mxu1 %v596_v9  ;;  %v258_v20 = vld [vmem:[%s1551_s27 + $0xa0] sm:$0xff] }
  0x86   : > { %372 = vmatprep.subr.mxu0 %v1384_v0  ;;  %650 = vmatpush1.msra.mxu1 %v595_v11 }
  0x87   : > { %373 = vmatpush2.msra.mxu0 %v330_v21  ;;  %651 = vmatprep.subr.mxu1 %v594_v13  ;;  %v261_v21 = vld [vmem:[%s1551_s27 + $0xb8] sm:$0xff] }
  0x88   : > { %374 = vmatprep.subr.mxu0 %v1384_v0  ;;  %652 = vmatpush1.msra.mxu1 %v593_v34 }
  0x89   : > { %375 = vmatpush2.msra.mxu0 %v329_v22  ;;  %v260_v22 = vld [vmem:[%s1551_s27 + $0xb0] sm:$0xff]  ;;  %653 = vmatprep.subr.mxu1 %v592_v35 }
  0x8a   : > { %376 = vmatprep.subr.mxu0 %v1384_v0 }
  0x8b   : > { %377 = vmatpush2.msra.mxu0 %v328_v23  ;;  %v263_v23 = vld [vmem:[%s1551_s27 + $0xc8] sm:$0xff] }
  0x8c   : > { %378 = vmatprep.subr.mxu0 %v1384_v0 }
  0x8d   : > { %379 = vmatpush2.msra.mxu0 %v327_v24  ;;  %v262_v24 = vld [vmem:[%s1551_s27 + $0xc0] sm:$0xff] }
  0x8e   : > { %380 = vmatprep.subr.mxu0 %v1384_v0 }
  0x8f   : > { %381 = vmatpush2.msra.mxu0 %v326_v25  ;;  %v265_v25 = vld [vmem:[%s1551_s27 + $0xd8] sm:$0xff] }
  0x90   : > { %382 = vmatprep.subr.mxu0 %v1384_v0 }
  0x91   : > { %383 = vmatpush2.msra.mxu0 %v325_v26  ;;  %v264_v26 = vld [vmem:[%s1551_s27 + $0xd0] sm:$0xff] }
  0x92   : > { %384 = vmatprep.subr.mxu0 %v1384_v0 }
  0x93   : > { %385 = vmatpush2.msra.mxu0 %v324_v27  ;;  %v267_v27 = vld [vmem:[%s1551_s27 + $0xe8] sm:$0xff] }
  0x94   : > { %386 = vmatprep.subr.mxu0 %v1384_v0 }
  0x95   : > { %387 = vmatpush2.msra.mxu0 %v323_v28  ;;  %v266_v28 = vld [vmem:[%s1551_s27 + $0xe0] sm:$0xff] }
  0x96   : > { %388 = vmatprep.subr.mxu0 %v1384_v0 }
  0x97   : > { %389 = vmatpush2.msra.mxu0 %v322_v29  ;;  %v269_v29 = vld [vmem:[%s1551_s27 + $0xf8] sm:$0xff] }
  0x98   : > { %390 = vmatprep.subr.mxu0 %v1384_v0 }
  0x99   : > { %391 = vmatpush2.msra.mxu0 %v321_v30  ;;  %v268_v30 = vld [vmem:[%s1551_s27 + $0xf0] sm:$0xff] }
  0x9a   : > { %392 = vmatprep.subr.mxu0 %v1384_v0 }
  0x9b   : > { %393 = vmatpush2.msra.mxu0 %v320_v31  ;;  %v271_v31 = vld [vmem:[%s1551_s27 + $0x108] sm:$0xff] }
  0x9c   : > { %394 = vmatprep.subr.mxu0 %v1384_v0 }
  0x9d   : > { %395 = vmatpush2.msra.mxu0 %v319_v32  ;;  %v270_v32 = vld [vmem:[%s1551_s27 + $0x100] sm:$0xff] }
  0x9e   : > { %396 = vmatprep.subr.mxu0 %v1384_v0 }
  0x9f   : > { %397 = vmatpush2.msra.mxu0 %v318_v33  ;;  %v273_v33 = vld [vmem:[%s1551_s27 + $0x118] sm:$0xff] }
  0xa0   : > { %399 = vmatmul.mubr.f32.vlgmr.msra.gmra.mxu0 %v238_v37  ;;  %v591_v37 = vld [vmem:[#allocation7] sm:$0xff] }
  0xa1   : > { %403 = vmatprep.mubr.f32.mxu0 %v241_v39  ;;  %654 = vmatpush1.msra.mxu1 %v591_v37  ;;  %v274_v39 = vld [vmem:[%s1551_s27 + $0x120] sm:$0xff] }
  0xa4   : > { %404 = vmatmul.mubr.f32.gmra.mxu0 %v240_v43  ;;  %v278_v43 = vld [vmem:[%s1551_s27 + $0x140] sm:$0xff] }
  0xa5   : > { %408 = vmatprep.mubr.f32.mxu0 %v243_v45  ;;  %v280_v45 = vld [vmem:[%s1551_s27 + $0x150] sm:$0xff] }
  0xa8   : > { %409 = vmatmul.mubr.f32.gmra.mxu0 %v242_v49  ;;  %v284_v49 = vld [vmem:[%s1551_s27 + $0x170] sm:$0xff] }
  0xa9   : > { %413 = vmatprep.mubr.f32.mxu0 %v245_v51  ;;  %v286_v51 = vld [vmem:[%s1551_s27 + $0x180] sm:$0xff] }
  0xac   : > { %414 = vmatmul.mubr.f32.gmra.mxu0 %v244_v55  ;;  %v290_v55 = vld [vmem:[%s1551_s27 + $0x1a0] sm:$0xff] }
  0xad   : > { %418 = vmatprep.mubr.f32.mxu0 %v247_v57  ;;  %v292_v57 = vld [vmem:[%s1551_s27 + $0x1b0] sm:$0xff] }
  0xb0   : > { %419 = vmatmul.mubr.f32.gmra.mxu0 %v246_v61  ;;  %v296_v61 = vld [vmem:[%s1551_s27 + $0x1d0] sm:$0xff] }
  0xb1   : > { %423 = vmatprep.mubr.f32.mxu0 %v249_v63  ;;  %v298_v63 = vld [vmem:[%s1551_s27 + $0x1e0] sm:$0xff] }
  0xb4   : > { %424 = vmatmul.mubr.f32.gmra.mxu0 %v248_v4 }
  0xb5   : > { %428 = vmatprep.mubr.f32.mxu0 %v251_v6 }
  0xb8   : > { %429 = vmatmul.mubr.f32.gmra.mxu0 %v250_v10 }
  0xb9   : > { %433 = vmatprep.mubr.f32.mxu0 %v253_v12 }
  0xbc   : > { %434 = vmatmul.mubr.f32.gmra.mxu0 %v252_v14 }
  0xbd   : > { %438 = vmatprep.mubr.f32.mxu0 %v255_v15 }
  0xc0   : > { %439 = vmatmul.mubr.f32.gmra.mxu0 %v254_v16 }
  0xc1   : > { %443 = vmatprep.mubr.f32.mxu0 %v257_v17 }
  0xc4   : > { %444 = vmatmul.mubr.f32.gmra.mxu0 %v256_v18 }
  0xc5   : > { %448 = vmatprep.mubr.f32.mxu0 %v259_v19 }
  0xc8   : > { %449 = vmatmul.mubr.f32.gmra.mxu0 %v258_v20 }
  0xc9   : > { %453 = vmatprep.mubr.f32.mxu0 %v261_v21 }
  0xcc   : > { %454 = vmatmul.mubr.f32.gmra.mxu0 %v260_v22 }
  0xcd   : > { %458 = vmatprep.mubr.f32.mxu0 %v263_v23 }
  0xd0   : > { %459 = vmatmul.mubr.f32.gmra.mxu0 %v262_v24 }
  0xd1   : > { %463 = vmatprep.mubr.f32.mxu0 %v265_v25 }
  0xd4   : > { %464 = vmatmul.mubr.f32.gmra.mxu0 %v264_v26 }
  0xd5   : > { %468 = vmatprep.mubr.f32.mxu0 %v267_v27 }
  0xd8   : > { %469 = vmatmul.mubr.f32.gmra.mxu0 %v266_v28 }
  0xd9   : > { %473 = vmatprep.mubr.f32.mxu0 %v269_v29 }
  0xdc   : > { %474 = vmatmul.mubr.f32.gmra.mxu0 %v268_v30 }
  0xdd   : > { %478 = vmatprep.mubr.f32.mxu0 %v271_v31 }
  0xe0   : > { %479 = vmatmul.mubr.f32.gmra.mxu0 %v270_v32 }
  0xe1   : > { %483 = vmatprep.mubr.f32.mxu0 %v273_v33 }
  0xe4   : > { %484 = vmatmul.mubr.f32.gmra.mxu0 %v272_v36 }
  0xe5   : > { %488 = vmatprep.mubr.f32.mxu0 %v275_v38 }
  0xe8   : > { %489 = vmatmul.mubr.f32.gmra.mxu0 %v274_v39 }
  0xe9   : > { %493 = vmatprep.mubr.f32.mxu0 %v277_v40 }
  0xec   : > { %494 = vmatmul.mubr.f32.gmra.mxu0 %v276_v41 }
  0xed   : > { %498 = vmatprep.mubr.f32.mxu0 %v279_v42 }
  0xf0   : > { %499 = vmatmul.mubr.f32.gmra.mxu0 %v278_v43 }
  0xf1   : > { %503 = vmatprep.mubr.f32.mxu0 %v281_v44 }
  0xf4   : > { %504 = vmatmul.mubr.f32.gmra.mxu0 %v280_v45 }
  0xf5   : > { %508 = vmatprep.mubr.f32.mxu0 %v283_v46 }
  0xf8   : > { %509 = vmatmul.mubr.f32.gmra.mxu0 %v282_v47 }
  0xf9   : > { %513 = vmatprep.mubr.f32.mxu0 %v285_v48 }
  0xfc   : > { %514 = vmatmul.mubr.f32.gmra.mxu0 %v284_v49 }
  0xfd   : > { %518 = vmatprep.mubr.f32.mxu0 %v287_v50 }
 0x100   : > { %519 = vmatmul.mubr.f32.gmra.mxu0 %v286_v51 }
 0x101   : > { %523 = vmatprep.mubr.f32.mxu0 %v289_v52 }
 0x104   : > { %524 = vmatmul.mubr.f32.gmra.mxu0 %v288_v53 }
 0x105   : > { %528 = vmatprep.mubr.f32.mxu0 %v291_v54 }
 0x108   : > { %529 = vmatmul.mubr.f32.gmra.mxu0 %v290_v55 }
 0x109   : > { %533 = vmatprep.mubr.f32.mxu0 %v293_v56 }
 0x10c   : > { %534 = vmatmul.mubr.f32.gmra.mxu0 %v292_v57 }
 0x10d   : > { %538 = vmatprep.mubr.f32.mxu0 %v295_v58 }
 0x110   : > { %539 = vmatmul.mubr.f32.gmra.mxu0 %v294_v59 }
 0x111   : > { %543 = vmatprep.mubr.f32.mxu0 %v297_v60 }
 0x114   : > { %544 = vmatmul.mubr.f32.gmra.mxu0 %v296_v61 }
 0x115   : > { %548 = vmatprep.mubr.f32.mxu0 %v299_v62 }
 0x118   : > { %549 = vmatmul.mubr.f32.gmra.mxu0 %v298_v63 }
 0x119   : > { %553 = vmatprep.mubr.f32.mxu0 %v301_v1 }
 0x11c   : > { %554 = vmatmul.mubr.f32.gmra.mxu0 %v300_v2 }
 0x160   : > { %v400_v3 = vpop.f32.mrf.mxu0 }
 0x161   : > { %v559_v4 = vmax.f32 %v400_v3, 0.0 }
 0x162   : > { %v402_v5 = vpop.f32.mrf.mxu0 }
 0x163   : > { %688 = vmatmul.mubr.f32.vlgmr.msra.gmra.mxu1 %v559_v4 }
 0x164   : > { %v405_v6 = vpop.f32.mrf.mxu0  ;;  %693 = vmatprep.mubr.f32.mxu1 %v1384_v0 }
 0x165   : > { %v560_v7 = vmax.f32 %v405_v6, 0.0 }
 0x166   : > { %v407_v8 = vpop.f32.mrf.mxu0 }
 0x167   : > { %694 = vmatmul.mubr.f32.gmra.mxu1 %v560_v7 }
 0x168   : > { %v410_v9 = vpop.f32.mrf.mxu0  ;;  %699 = vmatprep.mubr.f32.mxu1 %v1384_v0 }
 0x169   : > { %v561_v10 = vmax.f32 %v410_v9, 0.0 }
 0x16a   : > { %v412_v11 = vpop.f32.mrf.mxu0 }
 0x16b   : > { %700 = vmatmul.mubr.f32.gmra.mxu1 %v561_v10 }
 0x16c   : > { %v415_v12 = vpop.f32.mrf.mxu0  ;;  %705 = vmatprep.mubr.f32.mxu1 %v1384_v0 }
 0x16d   : > { %v562_v13 = vmax.f32 %v415_v12, 0.0 }
 0x16e   : > { %v417_v14 = vpop.f32.mrf.mxu0 }
 0x16f   : > { %706 = vmatmul.mubr.f32.gmra.mxu1 %v562_v13 }
 0x170   : > { %v420_v15 = vpop.f32.mrf.mxu0  ;;  %711 = vmatprep.mubr.f32.mxu1 %v1384_v0 }
 0x171   : > { %v563_v16 = vmax.f32 %v420_v15, 0.0 }
 0x172   : > { %v422_v17 = vpop.f32.mrf.mxu0 }
 0x173   : > { %712 = vmatmul.mubr.f32.gmra.mxu1 %v563_v16 }
 0x174   : > { %v425_v18 = vpop.f32.mrf.mxu0  ;;  %717 = vmatprep.mubr.f32.mxu1 %v1384_v0 }
 0x175   : > { %v564_v19 = vmax.f32 %v425_v18, 0.0 }
 0x176   : > { %v427_v20 = vpop.f32.mrf.mxu0 }
 0x177   : > { %718 = vmatmul.mubr.f32.gmra.mxu1 %v564_v19 }
 0x178   : > { %v430_v21 = vpop.f32.mrf.mxu0  ;;  %723 = vmatprep.mubr.f32.mxu1 %v1384_v0 }
 0x179   : > { %v565_v22 = vmax.f32 %v430_v21, 0.0 }
 0x17a   : > { %v432_v23 = vpop.f32.mrf.mxu0 }
 0x17b   : > { %724 = vmatmul.mubr.f32.gmra.mxu1 %v565_v22 }
 0x17c   : > { %v435_v24 = vpop.f32.mrf.mxu0  ;;  %729 = vmatprep.mubr.f32.mxu1 %v1384_v0 }
 0x17d   : > { %v566_v25 = vmax.f32 %v435_v24, 0.0 }
 0x17e   : > { %v437_v26 = vpop.f32.mrf.mxu0 }
 0x17f   : > { %730 = vmatmul.mubr.f32.gmra.mxu1 %v566_v25 }
 0x180   : > { %v440_v27 = vpop.f32.mrf.mxu0  ;;  %735 = vmatprep.mubr.f32.mxu1 %v1384_v0 }
 0x181   : > { %v567_v28 = vmax.f32 %v440_v27, 0.0 }
 0x182   : > { %v442_v29 = vpop.f32.mrf.mxu0 }
 0x183   : > { %736 = vmatmul.mubr.f32.gmra.mxu1 %v567_v28 }
 0x184   : > { %v445_v30 = vpop.f32.mrf.mxu0  ;;  %741 = vmatprep.mubr.f32.mxu1 %v1384_v0 }
 0x185   : > { %v568_v31 = vmax.f32 %v445_v30, 0.0 }
 0x186   : > { %v447_v32 = vpop.f32.mrf.mxu0 }
 0x187   : > { %742 = vmatmul.mubr.f32.gmra.mxu1 %v568_v31 }
 0x188   : > { %v450_v33 = vpop.f32.mrf.mxu0  ;;  %747 = vmatprep.mubr.f32.mxu1 %v1384_v0 }
 0x189   : > { %v569_v34 = vmax.f32 %v450_v33, 0.0 }
 0x18a   : > { %v452_v35 = vpop.f32.mrf.mxu0 }
 0x18b   : > { %748 = vmatmul.mubr.f32.gmra.mxu1 %v569_v34 }
 0x18c   : > { %v455_v36 = vpop.f32.mrf.mxu0  ;;  %753 = vmatprep.mubr.f32.mxu1 %v1384_v0 }
 0x18d   : > { %v570_v37 = vmax.f32 %v455_v36, 0.0 }
 0x18e   : > { %v457_v38 = vpop.f32.mrf.mxu0 }
 0x18f   : > { %754 = vmatmul.mubr.f32.gmra.mxu1 %v570_v37 }
 0x190   : > { %v460_v39 = vpop.f32.mrf.mxu0  ;;  %759 = vmatprep.mubr.f32.mxu1 %v1384_v0 }
 0x191   : > { %v571_v40 = vmax.f32 %v460_v39, 0.0 }
 0x192   : > { %v462_v41 = vpop.f32.mrf.mxu0 }
 0x193   : > { %760 = vmatmul.mubr.f32.gmra.mxu1 %v571_v40 }
 0x194   : > { %v465_v42 = vpop.f32.mrf.mxu0  ;;  %765 = vmatprep.mubr.f32.mxu1 %v1384_v0 }
 0x195   : > { %v572_v43 = vmax.f32 %v465_v42, 0.0 }
 0x196   : > { %v467_v44 = vpop.f32.mrf.mxu0 }
 0x197   : > { %766 = vmatmul.mubr.f32.gmra.mxu1 %v572_v43 }
 0x198   : > { %v470_v45 = vpop.f32.mrf.mxu0  ;;  %771 = vmatprep.mubr.f32.mxu1 %v1384_v0 }
 0x199   : > { %v573_v46 = vmax.f32 %v470_v45, 0.0 }
 0x19a   : > { %v472_v47 = vpop.f32.mrf.mxu0 }
 0x19b   : > { %772 = vmatmul.mubr.f32.gmra.mxu1 %v573_v46 }
 0x19c   : > { %v475_v48 = vpop.f32.mrf.mxu0  ;;  %777 = vmatprep.mubr.f32.mxu1 %v1384_v0 }
 0x19d   : > { %v574_v49 = vmax.f32 %v475_v48, 0.0 }
 0x19e   : > { %v477_v50 = vpop.f32.mrf.mxu0 }
 0x19f   : > { %778 = vmatmul.mubr.f32.gmra.mxu1 %v574_v49 }
 0x1a0   : > { %v480_v51 = vpop.f32.mrf.mxu0  ;;  %783 = vmatprep.mubr.f32.mxu1 %v1384_v0 }
 0x1a1   : > { %v575_v52 = vmax.f32 %v480_v51, 0.0 }
 0x1a2   : > { %v482_v53 = vpop.f32.mrf.mxu0 }
 0x1a3   : > { %784 = vmatmul.mubr.f32.gmra.mxu1 %v575_v52 }
 0x1a4   : > { %v485_v54 = vpop.f32.mrf.mxu0  ;;  %789 = vmatprep.mubr.f32.mxu1 %v1384_v0 }
 0x1a5   : > { %v576_v55 = vmax.f32 %v485_v54, 0.0 }
 0x1a6   : > { %v487_v56 = vpop.f32.mrf.mxu0 }
 0x1a7   : > { %790 = vmatmul.mubr.f32.gmra.mxu1 %v576_v55 }
 0x1a8   : > { %v490_v57 = vpop.f32.mrf.mxu0  ;;  %795 = vmatprep.mubr.f32.mxu1 %v1384_v0 }
 0x1a9   : > { %v577_v58 = vmax.f32 %v490_v57, 0.0 }
 0x1aa   : > { %v492_v59 = vpop.f32.mrf.mxu0 }
 0x1ab   : > { %796 = vmatmul.mubr.f32.gmra.mxu1 %v577_v58 }
 0x1ac   : > { %v495_v60 = vpop.f32.mrf.mxu0  ;;  %801 = vmatprep.mubr.f32.mxu1 %v1384_v0 }
 0x1ad   : > { %v578_v61 = vmax.f32 %v495_v60, 0.0 }
 0x1ae   : > { %v497_v62 = vpop.f32.mrf.mxu0 }
 0x1af   : > { %802 = vmatmul.mubr.f32.gmra.mxu1 %v578_v61 }
 0x1b0   : > { %v500_v63 = vpop.f32.mrf.mxu0  ;;  %807 = vmatprep.mubr.f32.mxu1 %v1384_v0 }
 0x1b1   : > { %v579_v1 = vmax.f32 %v500_v63, 0.0 }
 0x1b2   : > { %v502_v2 = vpop.f32.mrf.mxu0 }
 0x1b3   : > { %808 = vmatmul.mubr.f32.gmra.mxu1 %v579_v1 }
 0x1b4   : > { %v505_v3 = vpop.f32.mrf.mxu0  ;;  %813 = vmatprep.mubr.f32.mxu1 %v1384_v0 }
 0x1b5   : > { %v580_v4 = vmax.f32 %v505_v3, 0.0 }
 0x1b6   : > { %v507_v5 = vpop.f32.mrf.mxu0 }
 0x1b7   : > { %814 = vmatmul.mubr.f32.gmra.mxu1 %v580_v4 }
 0x1b8   : > { %v510_v6 = vpop.f32.mrf.mxu0  ;;  %819 = vmatprep.mubr.f32.mxu1 %v1384_v0 }
 0x1b9   : > { %v581_v7 = vmax.f32 %v510_v6, 0.0 }
 0x1ba   : > { %v512_v8 = vpop.f32.mrf.mxu0 }
 0x1bb   : > { %820 = vmatmul.mubr.f32.gmra.mxu1 %v581_v7 }
 0x1bc   : > { %v515_v9 = vpop.f32.mrf.mxu0  ;;  %825 = vmatprep.mubr.f32.mxu1 %v1384_v0 }
 0x1bd   : > { %v582_v10 = vmax.f32 %v515_v9, 0.0 }
 0x1be   : > { %v517_v11 = vpop.f32.mrf.mxu0 }
 0x1bf   : > { %826 = vmatmul.mubr.f32.gmra.mxu1 %v582_v10 }
 0x1c0   : > { %v520_v12 = vpop.f32.mrf.mxu0  ;;  %831 = vmatprep.mubr.f32.mxu1 %v1384_v0 }
 0x1c1   : > { %v583_v13 = vmax.f32 %v520_v12, 0.0 }
 0x1c2   : > { %v522_v14 = vpop.f32.mrf.mxu0 }
 0x1c3   : > { %832 = vmatmul.mubr.f32.gmra.mxu1 %v583_v13 }
 0x1c4   : > { %v525_v15 = vpop.f32.mrf.mxu0  ;;  %837 = vmatprep.mubr.f32.mxu1 %v1384_v0 }
 0x1c5   : > { %v584_v16 = vmax.f32 %v525_v15, 0.0 }
 0x1c6   : > { %v527_v17 = vpop.f32.mrf.mxu0 }
 0x1c7   : > { %838 = vmatmul.mubr.f32.gmra.mxu1 %v584_v16 }
 0x1c8   : > { %v530_v18 = vpop.f32.mrf.mxu0  ;;  %843 = vmatprep.mubr.f32.mxu1 %v1384_v0 }
 0x1c9   : > { %v585_v19 = vmax.f32 %v530_v18, 0.0 }
 0x1ca   : > { %v532_v20 = vpop.f32.mrf.mxu0 }
 0x1cb   : > { %844 = vmatmul.mubr.f32.gmra.mxu1 %v585_v19 }
 0x1cc   : > { %v535_v21 = vpop.f32.mrf.mxu0  ;;  %849 = vmatprep.mubr.f32.mxu1 %v1384_v0 }
 0x1cd   : > { %v586_v22 = vmax.f32 %v535_v21, 0.0 }
 0x1ce   : > { %v537_v23 = vpop.f32.mrf.mxu0 }
 0x1cf   : > { %850 = vmatmul.mubr.f32.gmra.mxu1 %v586_v22 }
 0x1d0   : > { %v540_v24 = vpop.f32.mrf.mxu0  ;;  %855 = vmatprep.mubr.f32.mxu1 %v1384_v0 }
 0x1d1   : > { %v587_v25 = vmax.f32 %v540_v24, 0.0 }
 0x1d2   : > { %v542_v26 = vpop.f32.mrf.mxu0 }
 0x1d3   : > { %856 = vmatmul.mubr.f32.gmra.mxu1 %v587_v25 }
 0x1d4   : > { %v545_v27 = vpop.f32.mrf.mxu0  ;;  %861 = vmatprep.mubr.f32.mxu1 %v1384_v0 }
 0x1d5   : > { %v588_v28 = vmax.f32 %v545_v27, 0.0 }
 0x1d6   : > { %v547_v29 = vpop.f32.mrf.mxu0 }
 0x1d7   : > { %862 = vmatmul.mubr.f32.gmra.mxu1 %v588_v28 }
 0x1d8   : > { %v550_v30 = vpop.f32.mrf.mxu0  ;;  %867 = vmatprep.mubr.f32.mxu1 %v1384_v0 }
 0x1d9   : > { %v589_v31 = vmax.f32 %v550_v30, 0.0 }
 0x1da   : > { %v552_v32 = vpop.f32.mrf.mxu0 }
 0x1db   : > { %868 = vmatmul.mubr.f32.gmra.mxu1 %v589_v31 }
 0x1dc   : > { %v555_v33 = vpop.f32.mrf.mxu0  ;;  %873 = vmatprep.mubr.f32.mxu1 %v1384_v0 }
 0x1dd   : > { %v590_v34 = vmax.f32 %v555_v33, 0.0 }
 0x1de   : > { %v557_v35 = vpop.f32.mrf.mxu0 }
 0x1df   : > { %874 = vmatmul.mubr.f32.gmra.mxu1 %v590_v34 }
 0x223   : > { %v689_v36 = vpop.f32.mrf.mxu1 }
 0x224   : > { %v880_v37 = vmax.f32 %v689_v36, 0.0 }
 0x225   : > { %v691_v38 = vpop.f32.mrf.mxu1 }
 0x226   : > { %944 = vst [vmem:[%s1691_s23] sm:$0xff] %v880_v37  ;;  %v881_v39 = vmax.f32 %v691_v38, 0.0 }
 0x227   : > { %v695_v40 = vpop.f32.mrf.mxu1 }
 0x228   : > { %945 = vst [vmem:[%s1691_s23 + $0x8] sm:$0xff] %v881_v39  ;;  %v882_v0 = vmax.f32 %v695_v40, 0.0 }
 0x229   : > { %v697_v41 = vpop.f32.mrf.mxu1 }
 0x22a   : > { %946 = vst [vmem:[%s1691_s23 + $0x10] sm:$0xff] %v882_v0  ;;  %v883_v42 = vmax.f32 %v697_v41, 0.0 }
 0x22b   : > { %v701_v43 = vpop.f32.mrf.mxu1 }
 0x22c   : > { %947 = vst [vmem:[%s1691_s23 + $0x18] sm:$0xff] %v883_v42  ;;  %v884_v44 = vmax.f32 %v701_v43, 0.0 }
 0x22d   : > { %v703_v45 = vpop.f32.mrf.mxu1 }
 0x22e   : > { %948 = vst [vmem:[%s1691_s23 + $0x20] sm:$0xff] %v884_v44  ;;  %v885_v46 = vmax.f32 %v703_v45, 0.0 }
 0x22f   : > { %v707_v47 = vpop.f32.mrf.mxu1 }
 0x230   : > { %949 = vst [vmem:[%s1691_s23 + $0x28] sm:$0xff] %v885_v46  ;;  %v886_v48 = vmax.f32 %v707_v47, 0.0 }
 0x231   : > { %v709_v49 = vpop.f32.mrf.mxu1 }
 0x232   : > { %950 = vst [vmem:[%s1691_s23 + $0x30] sm:$0xff] %v886_v48  ;;  %v887_v50 = vmax.f32 %v709_v49, 0.0 }
 0x233   : > { %v713_v51 = vpop.f32.mrf.mxu1 }
 0x234   : > { %951 = vst [vmem:[%s1691_s23 + $0x38] sm:$0xff] %v887_v50  ;;  %v888_v52 = vmax.f32 %v713_v51, 0.0 }
 0x235   : > { %v715_v53 = vpop.f32.mrf.mxu1 }
 0x236   : > { %952 = vst [vmem:[%s1691_s23 + $0x40] sm:$0xff] %v888_v52  ;;  %v889_v54 = vmax.f32 %v715_v53, 0.0 }
 0x237   : > { %v719_v55 = vpop.f32.mrf.mxu1 }
 0x238   : > { %953 = vst [vmem:[%s1691_s23 + $0x48] sm:$0xff] %v889_v54  ;;  %v890_v56 = vmax.f32 %v719_v55, 0.0 }
 0x239   : > { %v721_v57 = vpop.f32.mrf.mxu1 }
 0x23a   : > { %954 = vst [vmem:[%s1691_s23 + $0x50] sm:$0xff] %v890_v56  ;;  %v891_v58 = vmax.f32 %v721_v57, 0.0 }
 0x23b   : > { %v725_v59 = vpop.f32.mrf.mxu1 }
 0x23c   : > { %955 = vst [vmem:[%s1691_s23 + $0x58] sm:$0xff] %v891_v58  ;;  %v892_v60 = vmax.f32 %v725_v59, 0.0 }
 0x23d   : > { %v727_v61 = vpop.f32.mrf.mxu1 }
 0x23e   : > { %956 = vst [vmem:[%s1691_s23 + $0x60] sm:$0xff] %v892_v60  ;;  %v893_v62 = vmax.f32 %v727_v61, 0.0 }
 0x23f   : > { %v731_v63 = vpop.f32.mrf.mxu1 }
 0x240   : > { %957 = vst [vmem:[%s1691_s23 + $0x68] sm:$0xff] %v893_v62  ;;  %v894_v1 = vmax.f32 %v731_v63, 0.0 }
 0x241   : > { %v733_v2 = vpop.f32.mrf.mxu1 }
 0x242   : > { %958 = vst [vmem:[%s1691_s23 + $0x70] sm:$0xff] %v894_v1  ;;  %v895_v3 = vmax.f32 %v733_v2, 0.0 }
 0x243   : > { %v737_v4 = vpop.f32.mrf.mxu1 }
 0x244   : > { %959 = vst [vmem:[%s1691_s23 + $0x78] sm:$0xff] %v895_v3  ;;  %v896_v5 = vmax.f32 %v737_v4, 0.0 }
 0x245   : > { %v739_v6 = vpop.f32.mrf.mxu1 }
 0x246   : > { %960 = vst [vmem:[%s1691_s23 + $0x80] sm:$0xff] %v896_v5  ;;  %v897_v7 = vmax.f32 %v739_v6, 0.0 }
 0x247   : > { %v743_v8 = vpop.f32.mrf.mxu1 }
 0x248   : > { %961 = vst [vmem:[%s1691_s23 + $0x88] sm:$0xff] %v897_v7  ;;  %v898_v9 = vmax.f32 %v743_v8, 0.0 }
 0x249   : > { %v745_v10 = vpop.f32.mrf.mxu1 }
 0x24a   : > { %962 = vst [vmem:[%s1691_s23 + $0x90] sm:$0xff] %v898_v9  ;;  %v899_v11 = vmax.f32 %v745_v10, 0.0 }
 0x24b   : > { %v749_v12 = vpop.f32.mrf.mxu1 }
 0x24c   : > { %963 = vst [vmem:[%s1691_s23 + $0x98] sm:$0xff] %v899_v11  ;;  %v900_v13 = vmax.f32 %v749_v12, 0.0 }
 0x24d   : > { %v751_v14 = vpop.f32.mrf.mxu1 }
 0x24e   : > { %964 = vst [vmem:[%s1691_s23 + $0xa0] sm:$0xff] %v900_v13  ;;  %v901_v15 = vmax.f32 %v751_v14, 0.0 }
 0x24f   : > { %v755_v16 = vpop.f32.mrf.mxu1 }
 0x250   : > { %965 = vst [vmem:[%s1691_s23 + $0xa8] sm:$0xff] %v901_v15  ;;  %v902_v17 = vmax.f32 %v755_v16, 0.0 }
 0x251   : > { %v757_v18 = vpop.f32.mrf.mxu1 }
 0x252   : > { %966 = vst [vmem:[%s1691_s23 + $0xb0] sm:$0xff] %v902_v17  ;;  %v903_v19 = vmax.f32 %v757_v18, 0.0 }
 0x253   : > { %v761_v20 = vpop.f32.mrf.mxu1 }
 0x254   : > { %967 = vst [vmem:[%s1691_s23 + $0xb8] sm:$0xff] %v903_v19  ;;  %v904_v21 = vmax.f32 %v761_v20, 0.0 }
 0x255   : > { %v763_v22 = vpop.f32.mrf.mxu1 }
 0x256   : > { %968 = vst [vmem:[%s1691_s23 + $0xc0] sm:$0xff] %v904_v21  ;;  %v905_v23 = vmax.f32 %v763_v22, 0.0 }
 0x257   : > { %v767_v24 = vpop.f32.mrf.mxu1 }
 0x258   : > { %969 = vst [vmem:[%s1691_s23 + $0xc8] sm:$0xff] %v905_v23  ;;  %v906_v25 = vmax.f32 %v767_v24, 0.0 }
 0x259   : > { %v769_v26 = vpop.f32.mrf.mxu1 }
 0x25a   : > { %970 = vst [vmem:[%s1691_s23 + $0xd0] sm:$0xff] %v906_v25  ;;  %v907_v27 = vmax.f32 %v769_v26, 0.0 }
 0x25b   : > { %v773_v28 = vpop.f32.mrf.mxu1 }
 0x25c   : > { %971 = vst [vmem:[%s1691_s23 + $0xd8] sm:$0xff] %v907_v27  ;;  %v908_v29 = vmax.f32 %v773_v28, 0.0 }
 0x25d   : > { %v775_v30 = vpop.f32.mrf.mxu1 }
 0x25e   : > { %972 = vst [vmem:[%s1691_s23 + $0xe0] sm:$0xff] %v908_v29  ;;  %v909_v31 = vmax.f32 %v775_v30, 0.0 }
 0x25f   : > { %v779_v32 = vpop.f32.mrf.mxu1 }
 0x260   : > { %973 = vst [vmem:[%s1691_s23 + $0xe8] sm:$0xff] %v909_v31  ;;  %v910_v33 = vmax.f32 %v779_v32, 0.0 }
 0x261   : > { %v781_v34 = vpop.f32.mrf.mxu1 }
 0x262   : > { %974 = vst [vmem:[%s1691_s23 + $0xf0] sm:$0xff] %v910_v33  ;;  %v911_v35 = vmax.f32 %v781_v34, 0.0 }
 0x263   : > { %v785_v36 = vpop.f32.mrf.mxu1 }
 0x264   : > { %975 = vst [vmem:[%s1691_s23 + $0xf8] sm:$0xff] %v911_v35  ;;  %v912_v37 = vmax.f32 %v785_v36, 0.0 }
 0x265   : > { %v787_v38 = vpop.f32.mrf.mxu1 }
 0x266   : > { %976 = vst [vmem:[%s1691_s23 + $0x100] sm:$0xff] %v912_v37  ;;  %v913_v39 = vmax.f32 %v787_v38, 0.0 }
 0x267   : > { %v791_v40 = vpop.f32.mrf.mxu1 }
 0x268   : > { %977 = vst [vmem:[%s1691_s23 + $0x108] sm:$0xff] %v913_v39  ;;  %v914_v0 = vmax.f32 %v791_v40, 0.0 }
 0x269   : > { %v793_v41 = vpop.f32.mrf.mxu1 }
 0x26a   : > { %978 = vst [vmem:[%s1691_s23 + $0x110] sm:$0xff] %v914_v0  ;;  %v915_v42 = vmax.f32 %v793_v41, 0.0 }
 0x26b   : > { %v797_v43 = vpop.f32.mrf.mxu1 }
 0x26c   : > { %979 = vst [vmem:[%s1691_s23 + $0x118] sm:$0xff] %v915_v42  ;;  %v916_v44 = vmax.f32 %v797_v43, 0.0 }
 0x26d   : > { %v799_v45 = vpop.f32.mrf.mxu1 }
 0x26e   : > { %980 = vst [vmem:[%s1691_s23 + $0x120] sm:$0xff] %v916_v44  ;;  %v917_v46 = vmax.f32 %v799_v45, 0.0 }
 0x26f   : > { %v803_v47 = vpop.f32.mrf.mxu1 }
 0x270   : > { %981 = vst [vmem:[%s1691_s23 + $0x128] sm:$0xff] %v917_v46  ;;  %v918_v48 = vmax.f32 %v803_v47, 0.0 }
 0x271   : > { %v805_v49 = vpop.f32.mrf.mxu1 }
 0x272   : > { %982 = vst [vmem:[%s1691_s23 + $0x130] sm:$0xff] %v918_v48  ;;  %v919_v50 = vmax.f32 %v805_v49, 0.0 }
 0x273   : > { %v809_v51 = vpop.f32.mrf.mxu1 }
 0x274   : > { %983 = vst [vmem:[%s1691_s23 + $0x138] sm:$0xff] %v919_v50  ;;  %v920_v52 = vmax.f32 %v809_v51, 0.0 }
 0x275   : > { %v811_v53 = vpop.f32.mrf.mxu1 }
 0x276   : > { %984 = vst [vmem:[%s1691_s23 + $0x140] sm:$0xff] %v920_v52  ;;  %v921_v54 = vmax.f32 %v811_v53, 0.0 }
 0x277   : > { %v815_v55 = vpop.f32.mrf.mxu1 }
 0x278   : > { %985 = vst [vmem:[%s1691_s23 + $0x148] sm:$0xff] %v921_v54  ;;  %v922_v56 = vmax.f32 %v815_v55, 0.0 }
 0x279   : > { %v817_v57 = vpop.f32.mrf.mxu1 }
 0x27a   : > { %986 = vst [vmem:[%s1691_s23 + $0x150] sm:$0xff] %v922_v56  ;;  %v923_v58 = vmax.f32 %v817_v57, 0.0 }
 0x27b   : > { %v821_v59 = vpop.f32.mrf.mxu1 }
 0x27c   : > { %987 = vst [vmem:[%s1691_s23 + $0x158] sm:$0xff] %v923_v58  ;;  %v924_v60 = vmax.f32 %v821_v59, 0.0 }
 0x27d   : > { %v823_v61 = vpop.f32.mrf.mxu1 }
 0x27e   : > { %988 = vst [vmem:[%s1691_s23 + $0x160] sm:$0xff] %v924_v60  ;;  %v925_v62 = vmax.f32 %v823_v61, 0.0 }
 0x27f   : > { %v827_v63 = vpop.f32.mrf.mxu1 }
 0x280   : > { %989 = vst [vmem:[%s1691_s23 + $0x168] sm:$0xff] %v925_v62  ;;  %v926_v1 = vmax.f32 %v827_v63, 0.0 }
 0x281   : > { %v829_v2 = vpop.f32.mrf.mxu1 }
 0x282   : > { %990 = vst [vmem:[%s1691_s23 + $0x170] sm:$0xff] %v926_v1  ;;  %v927_v3 = vmax.f32 %v829_v2, 0.0 }
 0x283   : > { %v833_v4 = vpop.f32.mrf.mxu1 }
 0x284   : > { %991 = vst [vmem:[%s1691_s23 + $0x178] sm:$0xff] %v927_v3  ;;  %v928_v5 = vmax.f32 %v833_v4, 0.0 }
 0x285   : > { %v835_v6 = vpop.f32.mrf.mxu1 }
 0x286   : > { %992 = vst [vmem:[%s1691_s23 + $0x180] sm:$0xff] %v928_v5  ;;  %v929_v7 = vmax.f32 %v835_v6, 0.0 }
 0x287   : > { %v839_v8 = vpop.f32.mrf.mxu1 }
 0x288   : > { %993 = vst [vmem:[%s1691_s23 + $0x188] sm:$0xff] %v929_v7  ;;  %v930_v9 = vmax.f32 %v839_v8, 0.0 }
 0x289   : > { %v841_v10 = vpop.f32.mrf.mxu1 }
 0x28a   : > { %994 = vst [vmem:[%s1691_s23 + $0x190] sm:$0xff] %v930_v9  ;;  %v931_v11 = vmax.f32 %v841_v10, 0.0 }
 0x28b   : > { %v845_v12 = vpop.f32.mrf.mxu1 }
 0x28c   : > { %995 = vst [vmem:[%s1691_s23 + $0x198] sm:$0xff] %v931_v11  ;;  %v932_v13 = vmax.f32 %v845_v12, 0.0 }
 0x28d   : > { %v847_v14 = vpop.f32.mrf.mxu1 }
 0x28e   : > { %996 = vst [vmem:[%s1691_s23 + $0x1a0] sm:$0xff] %v932_v13  ;;  %v933_v15 = vmax.f32 %v847_v14, 0.0 }
 0x28f   : > { %v851_v16 = vpop.f32.mrf.mxu1 }
 0x290   : > { %997 = vst [vmem:[%s1691_s23 + $0x1a8] sm:$0xff] %v933_v15  ;;  %v934_v17 = vmax.f32 %v851_v16, 0.0 }
 0x291   : > { %v853_v18 = vpop.f32.mrf.mxu1 }
 0x292   : > { %998 = vst [vmem:[%s1691_s23 + $0x1b0] sm:$0xff] %v934_v17  ;;  %v935_v19 = vmax.f32 %v853_v18, 0.0 }
 0x293   : > { %v857_v20 = vpop.f32.mrf.mxu1 }
 0x294   : > { %999 = vst [vmem:[%s1691_s23 + $0x1b8] sm:$0xff] %v935_v19  ;;  %v936_v21 = vmax.f32 %v857_v20, 0.0 }
 0x295   : > { %v859_v22 = vpop.f32.mrf.mxu1 }
 0x296   : > { %1000 = vst [vmem:[%s1691_s23 + $0x1c0] sm:$0xff] %v936_v21  ;;  %v937_v23 = vmax.f32 %v859_v22, 0.0 }
 0x297   : > { %v863_v24 = vpop.f32.mrf.mxu1 }
 0x298   : > { %1001 = vst [vmem:[%s1691_s23 + $0x1c8] sm:$0xff] %v937_v23  ;;  %v938_v25 = vmax.f32 %v863_v24, 0.0 }
 0x299   : > { %v865_v26 = vpop.f32.mrf.mxu1 }
 0x29a   : > { %1002 = vst [vmem:[%s1691_s23 + $0x1d0] sm:$0xff] %v938_v25  ;;  %v939_v27 = vmax.f32 %v865_v26, 0.0 }
 0x29b   : > { %v869_v28 = vpop.f32.mrf.mxu1 }
 0x29c   : > { %1003 = vst [vmem:[%s1691_s23 + $0x1d8] sm:$0xff] %v939_v27  ;;  %v940_v29 = vmax.f32 %v869_v28, 0.0 }
 0x29d   : > { %v871_v30 = vpop.f32.mrf.mxu1 }
 0x29e   : > { %1004 = vst [vmem:[%s1691_s23 + $0x1e0] sm:$0xff] %v940_v29  ;;  %v941_v31 = vmax.f32 %v871_v30, 0.0 }
 0x29f   : > { %v875_v32 = vpop.f32.mrf.mxu1 }
 0x2a0   : > { %1005 = vst [vmem:[%s1691_s23 + $0x1e8] sm:$0xff] %v941_v31  ;;  %v942_v33 = vmax.f32 %v875_v32, 0.0  ;;  %1015 = sbr.rel (!%p1833_p0) target bundleno = 704 (0x2c0), region = 48 }
 0x2a1   : > { %v877_v34 = vpop.f32.mrf.mxu1 }
 0x2a2   : > { %1006 = vst [vmem:[%s1691_s23 + $0x1f0] sm:$0xff] %v942_v33  ;;  %v943_v35 = vmax.f32 %v877_v34, 0.0 }
 0x2a4   : > { %1007 = vst [vmem:[%s1691_s23 + $0x1f8] sm:$0xff] %v943_v35 }
 0x2a5   : > { %s1842_s7 = smov (!%p1018_p10, %s1017_s7), 32 }
 0x2a6   : > { %s1761_s10 = sshll.u32 %s1842_s7, 8 }
 0x2a7   : > { %s1023_s11 = ssub.s32 8192, %s1761_s10 }
 0x2a8   : > { %1024 = vsyncadd %s1009_s26, %s1023_s11  ;;  %p1145_p1 = scmp.ne.s32.totalorder %s1761_s10, 0  ;;  %s1157_s24 = sshll.u32 %s1429_s16, 13 }
 0x2a9   : > { %s1771_s5 = scalar_lea.hbm %s1821_s3, %s1157_s24  ;;  %s1030_s29 = sshll.u32 %s1691_s23, 4  ;;  %s1774_s29 = int_to_ptr.vmem [resolvable:$true] %s1030_s29 }
 0x2aa   : > { %s1305_s4 = scalar_lea.vmem %s1774_s29, %s1761_s10  ;;  %s1385_s22 = smov [#allocation8]  }
 0x2ab   : > { %p1306_p3 = scmp.ne.s32.totalorder %s1774_s29, %s1305_s4  ;;  %s1309_s8 = sshll.u32 %s1385_s22, 4  ;;  %s1310_s8 = int_to_ptr.vmem [resolvable:$false] %s1309_s8 }
 0x2ac   : > { %s1311_s16 = scalar_lea.vmem %s1310_s8, 16384  ;;  %p1312_p12 = scmp.lt.s32.totalorder %s1774_s29, %s1310_s8 }
 0x2ad   : > { %p1307_p7 = pnand %p1306_p3, %p1145_p1  ;;  %p1313_p8 = scmp.lt.s32.totalorder %s1311_s16, %s1305_s4 }
 0x2af   : > { %p1308_p9 = pneg %p1307_p7  ;;  %p1314_p4 = por %p1313_p8, %p1312_p12 }
 0x2b1   : > { %p1315_p6 = pnand %p1314_p4, %p1308_p9 }
 0x2b3   : > { %1318 = shalt.err (!%p1315_p6)
}
 0x2b4   : > { %s1319_s9 = scalar_lea.hbm %s1771_s5, %s1761_s10  ;;  %s1323_s27 = scalar_lea.hbm %s1821_s3, 19200 }
 0x2b5   : > { %p1320_p11 = scmp.ne.s32.totalorder %s1771_s5, %s1319_s9  ;;  %p1324_p13 = scmp.lt.s32.totalorder %s1771_s5, %s1821_s3 }
 0x2b6   : > { %p1325_p0 = scmp.lt.s32.totalorder %s1323_s27, %s1319_s9 }
 0x2b7   : > { %p1321_p2 = pnand %p1320_p11, %p1145_p1 }
 0x2b8   : > { %p1326_p10 = por %p1325_p0, %p1324_p13 }
 0x2b9   : > { %p1322_p5 = pneg %p1321_p2 }
 0x2bb   : > { %p1327_p3 = pnand %p1326_p10, %p1322_p5 }
 0x2bd   : > { %1330 = shalt.err (!%p1327_p3)
}
 0x2be   : > { %s1386_s7 = smov 256   ;;  %s1387_s11 = smov 16  }
 0x2bf   : > { %1036 = dma.vmem_to_hbm [thread:$0]  (%p1145_p1), %s1774_s29, %s1761_s10, %s1771_s5, %s1009_s26, %s1386_s7, %s1386_s7, %s1387_s11  }
 0x2c0 PF: > { %p1183_p7 = scmp.ge.s32.totalorder %s1373_s15, 2  ;;  %s1045_s24 = sand.u32 1, %s1361_s12  }
 0x2c1   : > { %p1834_p9 = scmp.ne.s32.totalorder %s1827_s25, 0  ;;  %s1046_s28 = scalar_lea.sflag [#allocation4], %s1045_s24 }
 0x2c3   : > { %p1176_p12 = pnand %p1183_p7, %p1834_p9 }
 0x2c5   : > { %p1177_p8 = pneg %p1176_p12 }
 0x2c7   : > { %1356 = dma.done.wait (%p1177_p8), %s1046_s28, 8192  }
 0x2c8   : > { %1358 = vsyncadd (%p1177_p8), %s1046_s28, 4294959104  ;;  %p17_p4 = scmp.ge.s32.totalorder %s1433_s18, 5   ;;  %s1835_s12 = smov %s1365_s13 }
 0x2c9   : > { %s1836_s13 = smov %s1369_s14  ;;  %s1837_s14 = smov %s1445_s21 }
 0x2ca   : > { %s1838_s15 = smov %s1433_s18  ;;  %19 = sbr.rel (!%p17_p4) target bundleno = 6 (0x6), region = 85 }
 0x2cf   :  { %1051 = vsyncpa [#allocation3], 1 }
 0x2d0   :  { %1053 = vsyncpa [#allocation3 + $0x1], 1 }
 0x2d1   :  { %1054 = vsyncpa [#allocation6], 1 }
 0x2d2   :  { %1055 = vsyncpa [#allocation4], 1 }
 0x2d3   :  { %1057 = vsyncpa [#allocation4 + $0x1], 1 }

</bundles_post_ra>
